<compile_context>
chip_gen: v5e
topology: v5e:2x2
jax: 0.10.0
libtpu: 0.0.40
codegen_flags: <defaults>
</compile_context>

<pallas_src>
import functools

import jax
import jax.numpy as jnp
from jax import lax
from jax.experimental import pallas as pl
from jax.experimental.pallas import tpu as pltpu

_EPS = 1e-8          # torch.nn.functional.cosine_similarity default eps
_EPS2 = _EPS * _EPS


def _round_up(x, m):
    return (x + m - 1) // m * m


def _vmem_capacity_bytes():
    try:
        return int(pltpu.get_tpu_info().vmem_capacity_bytes)
    except Exception:
        return 64 << 20      # conservative fallback (v7x per-TC size)


def _pick_tile_b(B, S, D, itemsize, budget_bytes):
    """Largest batch tile whose double-buffered inputs + in-kernel temps fit the budget."""
    per_row = (
        itemsize * 2 * (2 * S * D + D)      # double-buffered pos/neg/anchor input blocks
        + 4 * (2 * S * D)                   # f32 working sweep over one pos + one neg block
        + 4 * (4 * S * S + 12 * S + 64)     # O(S^2) count temps + score vectors
    )
    tb = int(budget_bytes // max(per_row, 1))
    tb = max(8, min(tb, 2048))
    tb = (tb // 8) * 8                      # keep anchor's sublane dim a multiple of 8
    if tb >= B:
        if B >= 16:
            # Whole batch fits in one tile: split in two so both TCs (v7x) get work.
            half = _round_up((B + 1) // 2, 8)
            tb = half if half < B else B
        else:
            tb = B                          # tiny batch: full-extent block
    return tb


def _count_neg_gt_pos(pos_scores, neg_scores):
    """count[b] = #{i : sort_asc(neg)[b,i] > sort_desc(pos)[b,i]} via the h-index identity."""
    TB, S = pos_scores.shape
    if S < 128:
        # Lane-dense layout: put the batch tile on the lane axis for the O(S^2) stage.
        pos_t = pos_scores.T                                                   # (S, TB)
        neg_t = neg_scores.T                                                   # (S, TB)
        gt = (neg_t[:, None, :] > pos_t[None, :, :]).astype(jnp.int32)          # (Sj, Sk, TB)
        row_counts = jnp.sum(gt, axis=1)                                        # (Sj, TB)
        m3 = lax.broadcasted_iota(jnp.int32, (S, 1, 1), 0) + 1                  # thresholds 1..S
        cnt_ge_m = jnp.sum((row_counts[None, :, :] >= m3).astype(jnp.int32),
                           axis=1)                                              # (Sm, TB)
        m2 = lax.broadcasted_iota(jnp.int32, (S, 1), 0) + 1
        ok = (cnt_ge_m >= m2).astype(jnp.float32)                               # (Sm, TB)
        count = jnp.sum(ok, axis=0, keepdims=True)                              # (1, TB)
        return count.T                                                          # (TB, 1)
    else:
        gt = (neg_scores[:, :, None] > pos_scores[:, None, :]).astype(jnp.int32)  # (TB,Sj,Sk)
        row_counts = jnp.sum(gt, axis=2)                                        # (TB, Sj)
        m = lax.broadcasted_iota(jnp.int32, (1, S), 1) + 1                      # (1, Sm)
        cnt_ge_m = jnp.sum((row_counts[:, :, None] >= m[:, None, :]).astype(jnp.int32),
                           axis=1)                                              # (TB, Sm)
        ok = (cnt_ge_m >= m).astype(jnp.float32)                                # (TB, Sm)
        return jnp.sum(ok, axis=1, keepdims=True)                               # (TB, 1)


def scoring_loss_kernel(anchor_ref, pos_ref, neg_ref, loss_ref, score_ref, *,
                        batch, margin, normalize):
    f32 = jnp.float32
    TB, S, _ = pos_ref.shape

    anchor = anchor_ref[...].astype(f32)                       # (TB, D)
    pos = pos_ref[...].astype(f32)                             # (TB, S, D)
    neg = neg_ref[...].astype(f32)                             # (TB, S, D)

    # --- cosine similarity: fused VPU dot + norm sweep (no MXU), rsqrt on EUP.
    a_sq = jnp.sum(anchor * anchor, axis=-1, keepdims=True)    # (TB, 1)
    a_scaled = (anchor * lax.rsqrt(jnp.maximum(a_sq, _EPS2)))[:, None, :]   # (TB, 1, D)

    p_dot = jnp.sum(pos * a_scaled, axis=-1)                   # (TB, S)
    p_sq = jnp.sum(pos * pos, axis=-1)                         # (TB, S)
    n_dot = jnp.sum(neg * a_scaled, axis=-1)                   # (TB, S)
    n_sq = jnp.sum(neg * neg, axis=-1)                         # (TB, S)

    pos_scores = p_dot * lax.rsqrt(jnp.maximum(p_sq, _EPS2))   # (TB, S)
    neg_scores = n_dot * lax.rsqrt(jnp.maximum(n_sq, _EPS2))   # (TB, S)

    # --- _calc_score: #(sorted-asc neg > sorted-desc pos), h-index form.
    count = _count_neg_gt_pos(pos_scores, neg_scores)          # (TB, 1) f32
    total_score = count * (1.0 / float(S)) if normalize else count

    # --- loss = relu(neg - pos + total_score + margin)
    loss = jnp.maximum(neg_scores - pos_scores + total_score + margin, 0.0)   # (TB, S)

    # Ragged last tile: NaN-safe masking of out-of-range rows (no wrapper jnp.pad).
    row_ids = pl.program_id(0) * TB + lax.broadcasted_iota(jnp.int32, (TB, 1), 0)
    valid = row_ids < batch                                     # (TB, 1) bool
    loss_rows = jnp.where(valid, jnp.sum(loss, axis=1, keepdims=True), 0.0)   # (TB, 1)
    score_rows = jnp.where(valid, total_score, 0.0)                            # (TB, 1)

    loss_part = jnp.sum(loss_rows, axis=0, keepdims=True)       # (1, 1)
    score_part = jnp.sum(score_rows, axis=0, keepdims=True)     # (1, 1)

    # Lane-dense (1, 8, 128) partial-sum blocks: unmasked stores.
    loss_ref[...] = jnp.broadcast_to(loss_part[:, :, None], (1, 8, 128))
    score_ref[...] = jnp.broadcast_to(score_part[:, :, None], (1, 8, 128))


def scoring_loss(anchor, pos_encs, neg_encs, *, margin=1.0, normalize=True):
    """JAX/Pallas equivalent of ScoringLoss.forward.

    anchor:   (B, D)
    pos_encs: (B, S, D)
    neg_encs: (B, S, D)
    Returns (loss_mean: scalar, total_score_mean_over_batch: (1,))
    """
    B, D = anchor.shape
    _, S, _ = pos_encs.shape
    if neg_encs.shape != pos_encs.shape:
        raise ValueError("kernel assumes pos_encs and neg_encs have the same shape")
    # TODO(synk): _process_shape trimming for P != N is not implemented (P == N assumed).

    itemsize = jnp.dtype(anchor.dtype).itemsize
    vmem_cap = _vmem_capacity_bytes()
    vmem_limit = int(min(vmem_cap * 3 // 4, 96 << 20))   # ~96 MiB on v5e/v6e, ~48 MiB on v7x
    budget = vmem_limit // 2
    TB = _pick_tile_b(B, S, D, itemsize, budget)
    num_tiles = pl.cdiv(B, TB)

    kernel = functools.partial(
        scoring_loss_kernel, batch=B, margin=float(margin), normalize=bool(normalize))

    loss_parts, score_parts = pl.pallas_call(
        kernel,
        grid=(num_tiles,),
        in_specs=[
            pl.BlockSpec((TB, D), lambda i: (i, 0)),
            pl.BlockSpec((TB, S, D), lambda i: (i, 0, 0)),
            pl.BlockSpec((TB, S, D), lambda i: (i, 0, 0)),
        ],
        out_specs=(
            pl.BlockSpec((1, 8, 128), lambda i: (i, 0, 0)),
            pl.BlockSpec((1, 8, 128), lambda i: (i, 0, 0)),
        ),
        out_shape=(
            jax.ShapeDtypeStruct((num_tiles, 8, 128), jnp.float32),
            jax.ShapeDtypeStruct((num_tiles, 8, 128), jnp.float32),
        ),
        compiler_params=pltpu.CompilerParams(
            dimension_semantics=("parallel",),   # shard batch tiles across TCs (v7x)
            vmem_limit_bytes=vmem_limit,
        ),
    )(anchor, pos_encs, neg_encs)

    loss_mean = jnp.sum(loss_parts[:, 0, 0]) / float(B * S)
    score_mean = jnp.sum(score_parts[:, 0, 0]) / float(B)
    return loss_mean, score_mean.reshape(1)


def scoring_loss_ref(anchor, pos_encs, neg_encs, *, margin=1.0, normalize=True):
    """Pure-JAX mirror of the PyTorch ScoringLoss.forward (for verification)."""
    dot_p = jnp.sum(anchor[:, None, :] * pos_encs, axis=-1)
    dot_n = jnp.sum(anchor[:, None, :] * neg_encs, axis=-1)
    na = jnp.maximum(jnp.linalg.norm(anchor, axis=-1, keepdims=True), _EPS)
    n_p = jnp.maximum(jnp.linalg.norm(pos_encs, axis=-1), _EPS)
    n_n = jnp.maximum(jnp.linalg.norm(neg_encs, axis=-1), _EPS)
    pos_scores = dot_p / (na * n_p)
    neg_scores = dot_n / (na * n_n)
    pos_sorted = -jnp.sort(-pos_scores, axis=1)   # descending
    neg_sorted = jnp.sort(neg_scores, axis=1)     # ascending
    comparison = (neg_sorted > pos_sorted).astype(jnp.float32)
    total = jnp.sum(comparison, axis=1, keepdims=True)
    if normalize:
        total = total / comparison.shape[1]
    loss = jnp.maximum(neg_scores - pos_scores + total + margin, 0.0)
    return loss.mean(), total.mean(axis=0)


if __name__ == "__main__":
    key = jax.random.PRNGKey(0)
    k1, k2, k3 = jax.random.split(key, 3)
    B, S, D = 4, 8, 32
    anchor = jax.random.normal(k1, (B, D), dtype=jnp.float32)
    pos_encs = jax.random.normal(k2, (B, S, D), dtype=jnp.float32)
    neg_encs = jax.random.normal(k3, (B, S, D), dtype=jnp.float32)

    loss, score = scoring_loss(anchor, pos_encs, neg_encs, margin=1.0, normalize=True)
    jax.block_until_ready((loss, score))

    ref_loss, ref_score = scoring_loss_ref(anchor, pos_encs, neg_encs,
                                           margin=1.0, normalize=True)
    assert jnp.allclose(loss, ref_loss, atol=1e-5, rtol=1e-5), (loss, ref_loss)
    assert jnp.allclose(score, ref_score, atol=1e-5, rtol=1e-5), (score, ref_score)
    print("KERNEL_OK")
</pallas_src>

<mosaic_0001>
module attributes {stable_mosaic.version = 11 : i64} {
  func.func @scoring_loss_kernel(%arg0: i32, %arg1: memref<4x32xf32, #tpu.memory_space<vmem>>, %arg2: memref<4x8x32xf32, #tpu.memory_space<vmem>>, %arg3: memref<4x8x32xf32, #tpu.memory_space<vmem>>, %arg4: memref<1x8x128xf32, #tpu.memory_space<vmem>>, %arg5: memref<1x8x128xf32, #tpu.memory_space<vmem>>) attributes {dimension_semantics = [#tpu.dimension_semantics<parallel>], iteration_bounds = array<i64: 1>, scalar_prefetch = 0 : i64, scratch_operands = 0 : i64, tpu.core_type = #tpu.core_type<tc>, window_params = [{transform_indices = @transform_0, window_bounds = array<i64: 4, 32>}, {transform_indices = @transform_1, window_bounds = array<i64: 4, 8, 32>}, {transform_indices = @transform_2, window_bounds = array<i64: 4, 8, 32>}, {transform_indices = @transform_3, window_bounds = array<i64: 1, 8, 128>}, {transform_indices = @transform_4, window_bounds = array<i64: 1, 8, 128>}]} {
    %c0 = arith.constant 0 : index
    %c0_0 = arith.constant 0 : index
    %0 = vector.load %arg1[%c0, %c0_0] : memref<4x32xf32, #tpu.memory_space<vmem>>, vector<4x32xf32>
    %c0_1 = arith.constant 0 : index
    %c0_2 = arith.constant 0 : index
    %c0_3 = arith.constant 0 : index
    %1 = vector.load %arg2[%c0_1, %c0_2, %c0_3] : memref<4x8x32xf32, #tpu.memory_space<vmem>>, vector<4x8x32xf32>
    %c0_4 = arith.constant 0 : index
    %c0_5 = arith.constant 0 : index
    %c0_6 = arith.constant 0 : index
    %2 = vector.load %arg3[%c0_4, %c0_5, %c0_6] : memref<4x8x32xf32, #tpu.memory_space<vmem>>, vector<4x8x32xf32>
    %3 = arith.mulf %0, %0 : vector<4x32xf32>
    %cst = arith.constant dense<0.000000e+00> : vector<4xf32>
    %4 = vector.multi_reduction <add>, %3, %cst [1] : vector<4x32xf32> to vector<4xf32>
    %5 = vector.shape_cast %4 : vector<4xf32> to vector<4x1xf32>
    %cst_7 = arith.constant 1.000000e-16 : f32
    %6 = vector.broadcast %cst_7 : f32 to vector<4x1xf32>
    %7 = arith.maximumf %5, %6 : vector<4x1xf32>
    %8 = math.rsqrt %7 : vector<4x1xf32>
    %9 = vector.broadcast %8 : vector<4x1xf32> to vector<4x32xf32>
    %10 = arith.mulf %0, %9 : vector<4x32xf32>
    %11 = vector.shape_cast %10 : vector<4x32xf32> to vector<4x1x32xf32>
    %12 = vector.broadcast %11 : vector<4x1x32xf32> to vector<4x8x32xf32>
    %13 = arith.mulf %1, %12 : vector<4x8x32xf32>
    %cst_8 = arith.constant dense<0.000000e+00> : vector<4x8xf32>
    %14 = vector.multi_reduction <add>, %13, %cst_8 [2] : vector<4x8x32xf32> to vector<4x8xf32>
    %15 = arith.mulf %1, %1 : vector<4x8x32xf32>
    %cst_9 = arith.constant dense<0.000000e+00> : vector<4x8xf32>
    %16 = vector.multi_reduction <add>, %15, %cst_9 [2] : vector<4x8x32xf32> to vector<4x8xf32>
    %17 = vector.broadcast %11 : vector<4x1x32xf32> to vector<4x8x32xf32>
    %18 = arith.mulf %2, %17 : vector<4x8x32xf32>
    %cst_10 = arith.constant dense<0.000000e+00> : vector<4x8xf32>
    %19 = vector.multi_reduction <add>, %18, %cst_10 [2] : vector<4x8x32xf32> to vector<4x8xf32>
    %20 = arith.mulf %2, %2 : vector<4x8x32xf32>
    %cst_11 = arith.constant dense<0.000000e+00> : vector<4x8xf32>
    %21 = vector.multi_reduction <add>, %20, %cst_11 [2] : vector<4x8x32xf32> to vector<4x8xf32>
    %cst_12 = arith.constant 1.000000e-16 : f32
    %22 = vector.broadcast %cst_12 : f32 to vector<4x8xf32>
    %23 = arith.maximumf %16, %22 : vector<4x8xf32>
    %24 = math.rsqrt %23 : vector<4x8xf32>
    %25 = arith.mulf %14, %24 : vector<4x8xf32>
    %cst_13 = arith.constant 1.000000e-16 : f32
    %26 = vector.broadcast %cst_13 : f32 to vector<4x8xf32>
    %27 = arith.maximumf %21, %26 : vector<4x8xf32>
    %28 = math.rsqrt %27 : vector<4x8xf32>
    %29 = arith.mulf %19, %28 : vector<4x8xf32>
    %30 = tpu.transpose %25, [1, 0] : vector<4x8xf32> -> vector<8x4xf32>
    %31 = tpu.transpose %29, [1, 0] : vector<4x8xf32> -> vector<8x4xf32>
    %32 = vector.shape_cast %31 : vector<8x4xf32> to vector<8x1x4xf32>
    %33 = vector.shape_cast %30 : vector<8x4xf32> to vector<1x8x4xf32>
    %34 = vector.broadcast %32 : vector<8x1x4xf32> to vector<8x8x4xf32>
    %35 = vector.broadcast %33 : vector<1x8x4xf32> to vector<8x8x4xf32>
    %36 = arith.cmpf ogt, %34, %35 : vector<8x8x4xf32>
    %37 = arith.extui %36 : vector<8x8x4xi1> to vector<8x8x4xi32>
    %cst_14 = arith.constant dense<0> : vector<8x4xi32>
    %38 = vector.multi_reduction <add>, %37, %cst_14 [1] : vector<8x8x4xi32> to vector<8x4xi32>
    %39 = tpu.iota {dimensions = array<i32: 0>} : vector<8x1x1xi32>
    %c1_i32 = arith.constant 1 : i32
    %40 = vector.broadcast %c1_i32 : i32 to vector<8x1x1xi32>
    %41 = arith.addi %39, %40 : vector<8x1x1xi32>
    %42 = vector.shape_cast %38 : vector<8x4xi32> to vector<1x8x4xi32>
    %43 = vector.broadcast %42 : vector<1x8x4xi32> to vector<8x8x4xi32>
    %44 = vector.broadcast %41 : vector<8x1x1xi32> to vector<8x8x4xi32>
    %45 = arith.cmpi sge, %43, %44 : vector<8x8x4xi32>
    %46 = arith.extui %45 : vector<8x8x4xi1> to vector<8x8x4xi32>
    %cst_15 = arith.constant dense<0> : vector<8x4xi32>
    %47 = vector.multi_reduction <add>, %46, %cst_15 [1] : vector<8x8x4xi32> to vector<8x4xi32>
    %48 = tpu.iota {dimensions = array<i32: 0>} : vector<8x1xi32>
    %c1_i32_16 = arith.constant 1 : i32
    %49 = vector.broadcast %c1_i32_16 : i32 to vector<8x1xi32>
    %50 = arith.addi %48, %49 : vector<8x1xi32>
    %51 = vector.broadcast %50 : vector<8x1xi32> to vector<8x4xi32>
    %52 = arith.cmpi sge, %47, %51 : vector<8x4xi32>
    %53 = arith.extui %52 : vector<8x4xi1> to vector<8x4xi32>
    %54 = arith.sitofp %53 : vector<8x4xi32> to vector<8x4xf32>
    %cst_17 = arith.constant dense<0.000000e+00> : vector<4xf32>
    %55 = vector.multi_reduction <add>, %54, %cst_17 [0] : vector<8x4xf32> to vector<4xf32>
    %56 = vector.shape_cast %55 : vector<4xf32> to vector<1x4xf32>
    %57 = tpu.transpose %56, [1, 0] : vector<1x4xf32> -> vector<4x1xf32>
    %cst_18 = arith.constant 1.250000e-01 : f32
    %58 = vector.broadcast %cst_18 : f32 to vector<4x1xf32>
    %59 = arith.mulf %57, %58 : vector<4x1xf32>
    %60 = arith.subf %29, %25 : vector<4x8xf32>
    %61 = vector.broadcast %59 : vector<4x1xf32> to vector<4x8xf32>
    %62 = arith.addf %60, %61 : vector<4x8xf32>
    %cst_19 = arith.constant 1.000000e+00 : f32
    %63 = vector.broadcast %cst_19 : f32 to vector<4x8xf32>
    %64 = arith.addf %62, %63 : vector<4x8xf32>
    %cst_20 = arith.constant 0.000000e+00 : f32
    %65 = vector.broadcast %cst_20 : f32 to vector<4x8xf32>
    %66 = arith.maximumf %64, %65 : vector<4x8xf32>
    %c4_i32 = arith.constant 4 : i32
    %67 = arith.muli %arg0, %c4_i32 : i32
    %68 = tpu.iota {dimensions = array<i32: 0>} : vector<4x1xi32>
    %69 = vector.broadcast %67 : i32 to vector<4x1xi32>
    %70 = arith.addi %69, %68 : vector<4x1xi32>
    %c4_i32_21 = arith.constant 4 : i32
    %71 = vector.broadcast %c4_i32_21 : i32 to vector<4x1xi32>
    %72 = arith.cmpi slt, %70, %71 : vector<4x1xi32>
    %cst_22 = arith.constant dense<0.000000e+00> : vector<4xf32>
    %73 = vector.multi_reduction <add>, %66, %cst_22 [1] : vector<4x8xf32> to vector<4xf32>
    %74 = vector.shape_cast %73 : vector<4xf32> to vector<4x1xf32>
    %cst_23 = arith.constant 0.000000e+00 : f32
    %75 = vector.broadcast %cst_23 : f32 to vector<4x1xf32>
    %76 = arith.select %72, %74, %75 : vector<4x1xi1>, vector<4x1xf32>
    %cst_24 = arith.constant 0.000000e+00 : f32
    %77 = vector.broadcast %cst_24 : f32 to vector<4x1xf32>
    %78 = arith.select %72, %59, %77 : vector<4x1xi1>, vector<4x1xf32>
    %cst_25 = arith.constant dense<0.000000e+00> : vector<1xf32>
    %79 = vector.multi_reduction <add>, %76, %cst_25 [0] : vector<4x1xf32> to vector<1xf32>
    %80 = vector.shape_cast %79 : vector<1xf32> to vector<1x1xf32>
    %cst_26 = arith.constant dense<0.000000e+00> : vector<1xf32>
    %81 = vector.multi_reduction <add>, %78, %cst_26 [0] : vector<4x1xf32> to vector<1xf32>
    %82 = vector.shape_cast %81 : vector<1xf32> to vector<1x1xf32>
    %83 = vector.shape_cast %80 : vector<1x1xf32> to vector<1x1x1xf32>
    %84 = vector.shape_cast %83 : vector<1x1x1xf32> to vector<1x1x1xf32>
    %85 = vector.broadcast %84 : vector<1x1x1xf32> to vector<1x8x128xf32>
    %c0_27 = arith.constant 0 : index
    %c0_28 = arith.constant 0 : index
    %c0_29 = arith.constant 0 : index
    %86 = vector.load %arg4[%c0_27, %c0_28, %c0_29] : memref<1x8x128xf32, #tpu.memory_space<vmem>>, vector<1x8x128xf32>
    tpu.vector_store %arg4[%c0_27, %c0_28, %c0_29], %85 {strides = array<i32>} : memref<1x8x128xf32, #tpu.memory_space<vmem>>, vector<1x8x128xf32>,
    %87 = vector.shape_cast %82 : vector<1x1xf32> to vector<1x1x1xf32>
    %88 = vector.shape_cast %87 : vector<1x1x1xf32> to vector<1x1x1xf32>
    %89 = vector.broadcast %88 : vector<1x1x1xf32> to vector<1x8x128xf32>
    %c0_30 = arith.constant 0 : index
    %c0_31 = arith.constant 0 : index
    %c0_32 = arith.constant 0 : index
    %90 = vector.load %arg5[%c0_30, %c0_31, %c0_32] : memref<1x8x128xf32, #tpu.memory_space<vmem>>, vector<1x8x128xf32>
    tpu.vector_store %arg5[%c0_30, %c0_31, %c0_32], %89 {strides = array<i32>} : memref<1x8x128xf32, #tpu.memory_space<vmem>>, vector<1x8x128xf32>,
    return
  }
  func.func @transform_0(%arg0: i32) -> (i32, i32) {
    %c0_i32 = arith.constant 0 : i32
    %c0_i32_0 = arith.constant 0 : i32
    return %arg0, %c0_i32 : i32, i32
  }
  func.func @transform_1(%arg0: i32) -> (i32, i32, i32) {
    %c0_i32 = arith.constant 0 : i32
    %c0_i32_0 = arith.constant 0 : i32
    %c0_i32_1 = arith.constant 0 : i32
    return %arg0, %c0_i32, %c0_i32_0 : i32, i32, i32
  }
  func.func @transform_2(%arg0: i32) -> (i32, i32, i32) {
    %c0_i32 = arith.constant 0 : i32
    %c0_i32_0 = arith.constant 0 : i32
    %c0_i32_1 = arith.constant 0 : i32
    return %arg0, %c0_i32, %c0_i32_0 : i32, i32, i32
  }
  func.func @transform_3(%arg0: i32) -> (i32, i32, i32) {
    %c0_i32 = arith.constant 0 : i32
    %c0_i32_0 = arith.constant 0 : i32
    %c0_i32_1 = arith.constant 0 : i32
    return %arg0, %c0_i32, %c0_i32_0 : i32, i32, i32
  }
  func.func @transform_4(%arg0: i32) -> (i32, i32, i32) {
    %c0_i32 = arith.constant 0 : i32
    %c0_i32_0 = arith.constant 0 : i32
    %c0_i32_1 = arith.constant 0 : i32
    return %arg0, %c0_i32, %c0_i32_0 : i32, i32, i32
  }
}

</mosaic_0001>

<bundles_post_ra>
// kernel: tpu_custom_call.1
= control target key start
LH: loop header
LB: loop body
LE: loop exit
PB: predicated region body
PF: predicated region fallthrough
CT: control target
= control target key end

     0   :  { %10 = vsyncpa [#allocation3], 0  ;;  %s1879_s0 = inlined_call_operand.hbm [shape: f32[4,32], index: 0, kind: input, shape index: {}]   ;;  %s1880_s1 = inlined_call_operand.hbm [shape: f32[4,8,32], index: 1, kind: input, shape index: {}]   ;;  %s1881_s2 = inlined_call_operand.hbm [shape: f32[4,8,32], index: 2, kind: input, shape index: {}]   ;;  %s1882_s3 = inlined_call_operand.hbm [shape: f32[1,8,128], index: 3, kind: output, shape index: {0}]   ;;  %s1883_s4 = inlined_call_operand.hbm [shape: f32[1,8,128], index: 4, kind: output, shape index: {1}]  }
   0x1   :  { %11 = vsyncpa [#allocation6], 0 }
   0x2   :  { %12 = vsyncpa [#allocation4], 0  ;;  %s29_s17 = sshll.u32 %s1880_s1, 4  ;;  %s30_s17 = int_to_ptr.hbm [resolvable:$true] %s29_s17 }
   0x3   :  { %13 = vsyncpa [#allocation10], 0  ;;  %s1086_s18 = smov [#allocation5]   ;;  %s19_s22 = sshll.u32 %s1879_s0, 4  ;;  %s20_s22 = int_to_ptr.hbm [resolvable:$true] %s19_s22 }
   0x4   :  { %s31_s19 = sshll.u32 %s1086_s18, 4  ;;  %s1087_s23 = smov 128   ;;  %s32_s19 = int_to_ptr.vmem [resolvable:$true] %s31_s19 }
   0x5   :  { %s1088_s24 = smov 8   ;;  %s1089_s25 = smov [#allocation2]  }
   0x6   :  { %37 = dma.hbm_to_vmem [thread:$0]  %s30_s17, 512, %s32_s19, [#allocation6], %s1087_s23, %s1087_s23, %s1088_s24  }
   0x7   :  { %s21_s26 = sshll.u32 %s1089_s25, 4  ;;  %s42_s29 = sshll.u32 %s1881_s2, 4  ;;  %s22_s26 = int_to_ptr.vmem [resolvable:$true] %s21_s26  ;;  %s43_s29 = int_to_ptr.hbm [resolvable:$true] %s42_s29 }
   0x8   :  { %24 = dma.hbm_to_vmem [thread:$0]  %s20_s22, 64, %s22_s26, [#allocation3]  }
   0x9   :  { %s1090_s1 = smov [#allocation7]  }
   0xa   :  { %s44_s30 = sshll.u32 %s1090_s1, 4  ;;  %s45_s30 = int_to_ptr.vmem [resolvable:$true] %s44_s30 }
   0xb   :  { %50 = dma.hbm_to_vmem [thread:$0]  %s43_s29, 512, %s45_s30, [#allocation6], %s1087_s23, %s1087_s23, %s1088_s24  }
   0xc   :  { %1078 = dma.done.wait [#allocation3], 64  }
   0xd   :  { %1079 = vsyncadd [#allocation3], 4294967232 }
   0xe   :  { %1080 = dma.done.wait [#allocation6], 1024  }
   0xf   :  { %1081 = vsyncadd [#allocation6], 4294966272  ;;  %v63_v0 = vld [vmem:[#allocation2] sm:$0xf]  ;;  %vm73_vm0 = vcmask 257024   ;;  %v1129_v1 = vld [vmem:[#allocation7 + $0x8] sm:$0xff] }
  0x10   :  { %vm105_vm1 = vcmask 261120   ;;  %v1131_v2 = vld [vmem:[#allocation7 + $0x18] sm:$0xff]  ;;  %v72_v3 = vmul.f32 %v63_v0, %v63_v0  ;;  %v151_v4 = vmul.f32 %v1129_v1, %v1129_v1  ;;  %v68_v6 = vld [vmem:[#allocation7] sm:$0xff]  ;;  %v70_v7 = vld [vmem:[#allocation7 + $0x10] sm:$0xff]  ;;  %s1093_s0 = smov [#allocation9]   ;;  %s904_s7 = sshll.u32 %s1883_s4, 4  ;;  %s905_s7 = int_to_ptr.hbm [resolvable:$true] %s904_s7 }
  0x11   :  { %v153_v5 = vmul.f32 %v1131_v2, %v1131_v2  ;;  %v150_v11 = vmul.f32 %v68_v6, %v68_v6  ;;  %v152_v12 = vmul.f32 %v70_v7, %v70_v7  ;;  %v64_v15 = vld [vmem:[#allocation5] sm:$0xff]  ;;  %v65_v18 = vld [vmem:[#allocation5 + $0x8] sm:$0xff]  ;;  %v66_v20 = vld [vmem:[#allocation5 + $0x10] sm:$0xff]  ;;  %s902_s2 = sshll.u32 %s1093_s0, 4  ;;  %s1094_s8 = smov [#allocation8]   ;;  %s903_s2 = int_to_ptr.vmem [resolvable:$true] %s902_s2 }
  0x12   :  { %v74_v8 = vsel %vm73_vm0, %v72_v3, 0.0  ;;  %v157_v9 = vsel %vm105_vm1, %v151_v4, 0.0  ;;  %v118_v16 = vmul.f32 %v64_v15, %v64_v15  ;;  %v119_v19 = vmul.f32 %v65_v18, %v65_v18  ;;  %v67_v24 = vld [vmem:[#allocation5 + $0x18] sm:$0xff]  ;;  %s891_s9 = sshll.u32 %s1094_s8, 4  ;;  %s893_s12 = sshll.u32 %s1882_s3, 4  ;;  %s892_s9 = int_to_ptr.vmem [resolvable:$true] %s891_s9  ;;  %s894_s12 = int_to_ptr.hbm [resolvable:$true] %s893_s12 }
  0x13   :  { %v163_v10 = vsel %vm105_vm1, %v153_v5, 0.0  ;;  %75 = vadd.xlane.f32.xlu0 %v74_v8  ;;  %158 = vadd.xlane.f32.xlu1 %v157_v9  ;;  %v154_v13 = vsel %vm105_vm1, %v150_v11, 0.0  ;;  %v160_v14 = vsel %vm105_vm1, %v152_v12, 0.0  ;;  %v120_v21 = vmul.f32 %v66_v20, %v66_v20 }
  0x14   :  { %164 = vadd.xlane.f32.xlu2 %v163_v10  ;;  %v122_v17 = vsel %vm105_vm1, %v118_v16, 0.0  ;;  %v125_v22 = vsel %vm105_vm1, %v119_v19, 0.0  ;;  %v121_v25 = vmul.f32 %v67_v24, %v67_v24 }
  0x15   :  { %v128_v23 = vsel %vm105_vm1, %v120_v21, 0.0 }
  0x16   :  { %v131_v26 = vsel %vm105_vm1, %v121_v25, 0.0 }
  0x1b   :  { %155 = vadd.xlane.f32.xlu0 %v154_v13  ;;  %161 = vadd.xlane.f32.xlu1 %v160_v14 }
  0x1c   :  { %123 = vadd.xlane.f32.xlu2 %v122_v17 }
  0x23   :  { %126 = vadd.xlane.f32.xlu0 %v125_v22  ;;  %129 = vadd.xlane.f32.xlu1 %v128_v23 }
  0x24   :  { %132 = vadd.xlane.f32.xlu2 %v131_v26 }
  0x86   :  { %v76_v27 = vpop.xlane.xlu0 %75  ;;  %v159_v61 = vpop.xlane.xlu1 %158 }
  0x87   :  { %v77_v28 = vmax.f32 %v76_v27, 1e-16  ;;  %v165_v60 = vpop.xlane.xlu2 %164  ;;  %v1155_v3 = vmax.f32 %v159_v61, 1e-16 }
  0x88   :  { %v1157_v4 = vmax.f32 %v165_v60, 1e-16 }
  0x89   :  { %940 = vrsqrt.f32 %v77_v28  ;;  %vm84_vm3 = vweird.f32 %v77_v28  ;;  %vm234_vm11 = vweird.f32 %v1155_v3 }
  0x8a   :  { %vm254_vm15 = vweird.f32 %v1157_v4 }
  0x8e   :  { %v156_v62 = vpop.xlane.xlu0 %155 }
  0x8f   :  { %v941_v29 = vpop.eup %940  ;;  %v124_v63 = vpop.xlane.xlu2 %123 }
  0x90   :  { %v79_v30 = vmul.f32 %v941_v29, %v77_v28  ;;  %vm85_vm2 = vweird.f32 %v941_v29 }
  0x91   :  { %vm86_vm4 = vmor %vm84_vm3, %vm85_vm2 }
  0x92   :  { %v80_v31 = vmul.f32 %v941_v29, %v79_v30 }
  0x94   :  { %v81_v32 = vmul.f32 0.5, %v80_v31 }
  0x96   :  { %v82_v33 = vsub.f32 1.5, %v81_v32 }
  0x97   :  { %v133_v13 = vpop.xlane.xlu2 %132 }
  0x98   :  { %v83_v34 = vmul.f32 %v941_v29, %v82_v33  ;;  %v1173_v17 = vmax.f32 %v133_v13, 1e-16 }
  0x9a   :  { %v87_v35 = vsel %vm86_vm4, %v941_v29, %v83_v34 }
  0x9b   :  { %v88_v36 = vmul.f32 %v87_v35, %v63_v0  ;;  %v214_v0 = vmax.f32 %v156_v62, 1e-16 }
  0x9d   :  { %v93_v37 = vperm.slane %v88_v36, 0  ;;  %v91_v38 = vrot.slane %v88_v36, 2  ;;  %v92_v39 = vrot.slane %v88_v36, 3  ;;  %v90_v40 = vrot.slane %v88_v36, 1 }
  0x9e   :  { %942 = vrsqrt.f32 %v214_v0  ;;  %vm224_vm7 = vweird.f32 %v214_v0 }
  0x9f   :  { %v134_v41 = vmul.f32 %v93_v37, %v68_v6  ;;  %v101_v42 = vmul.f32 %v93_v37, %v64_v15  ;;  %v95_v43 = vperm.slane %v91_v38, 0  ;;  %v96_v44 = vperm.slane %v92_v39, 0  ;;  %v127_v6 = vpop.xlane.xlu0 %126 }
  0xa0   :  { %v94_v48 = vperm.slane %v90_v40, 0  ;;  %v1163_v9 = vmax.f32 %v127_v6, 1e-16 }
  0xa1   :  { %v138_v45 = vsel %vm105_vm1, %v134_v41, 0.0  ;;  %v106_v46 = vsel %vm105_vm1, %v101_v42, 0.0  ;;  %v136_v47 = vmul.f32 %v95_v43, %v70_v7  ;;  %v137_v50 = vmul.f32 %v96_v44, %v1131_v2  ;;  %v162_v2 = vpop.xlane.xlu1 %161 }
  0xa2   :  { %139 = vadd.xlane.f32.xlu0 %v138_v45  ;;  %107 = vadd.xlane.f32.xlu1 %v106_v46  ;;  %v135_v51 = vmul.f32 %v94_v48, %v1129_v1  ;;  %v102_v52 = vmul.f32 %v94_v48, %v65_v18  ;;  %v103_v56 = vmul.f32 %v95_v43, %v66_v20  ;;  %v166_v1 = vmax.f32 %v124_v63, 1e-16 }
  0xa3   :  { %v144_v49 = vsel %vm105_vm1, %v136_v47, 0.0  ;;  %v147_v53 = vsel %vm105_vm1, %v137_v50, 0.0  ;;  %v104_v57 = vmul.f32 %v96_v44, %v67_v24  ;;  %v1159_v5 = vmax.f32 %v162_v2, 1e-16 }
  0xa4   :  { %145 = vadd.xlane.f32.xlu2 %v144_v49  ;;  %v141_v54 = vsel %vm105_vm1, %v135_v51, 0.0  ;;  %v109_v55 = vsel %vm105_vm1, %v102_v52, 0.0  ;;  %v112_v58 = vsel %vm105_vm1, %v103_v56, 0.0  ;;  %944 = vrsqrt.f32 %v166_v1  ;;  %v943_v7 = vpop.eup %942 }
  0xa5   :  { %v115_v59 = vsel %vm105_vm1, %v104_v57, 0.0  ;;  %946 = vrsqrt.f32 %v1155_v3  ;;  %v219_v11 = vmul.f32 %v943_v7, %v214_v0  ;;  %vm176_vm5 = vweird.f32 %v166_v1 }
  0xa6   :  { %948 = vrsqrt.f32 %v1157_v4  ;;  %vm225_vm8 = vweird.f32 %v943_v7  ;;  %vm244_vm13 = vweird.f32 %v1159_v5  ;;  %vm186_vm3 = vweird.f32 %v1163_v9 }
  0xa7   :  { %950 = vrsqrt.f32 %v1159_v5  ;;  %v220_v19 = vmul.f32 %v943_v7, %v219_v11  ;;  %vm226_vm10 = vmor %vm224_vm7, %vm225_vm8 }
  0xa8   :  { %952 = vrsqrt.f32 %v1163_v9 }
  0xa9   :  { %v130_v10 = vpop.xlane.xlu1 %129  ;;  %v221_v25 = vmul.f32 0.5, %v220_v19 }
  0xaa   :  { %148 = vadd.xlane.f32.xlu0 %v147_v53  ;;  %142 = vadd.xlane.f32.xlu1 %v141_v54  ;;  %v945_v8 = vpop.eup %944  ;;  %v1169_v15 = vmax.f32 %v130_v10, 1e-16 }
  0xab   :  { %v171_v12 = vmul.f32 %v945_v8, %v166_v1  ;;  %v1167_v14 = vpop.eup %946  ;;  %v222_v33 = vsub.f32 1.5, %v221_v25  ;;  %vm177_vm6 = vweird.f32 %v945_v8 }
  0xac   :  { %110 = vadd.xlane.f32.xlu2 %v109_v55  ;;  %v1171_v16 = vpop.eup %948  ;;  %v229_v21 = vmul.f32 %v1167_v14, %v1155_v3  ;;  %954 = vrsqrt.f32 %v1169_v15  ;;  %vm178_vm9 = vmor %vm176_vm5, %vm177_vm6  ;;  %vm235_vm12 = vweird.f32 %v1167_v14  ;;  %v1888_v55 = vlaneseq }
  0xad   :  { %v1175_v18 = vpop.eup %950  ;;  %v172_v20 = vmul.f32 %v945_v8, %v171_v12  ;;  %v249_v23 = vmul.f32 %v1171_v16, %v1157_v4  ;;  %956 = vrsqrt.f32 %v1173_v17  ;;  %v223_v42 = vmul.f32 %v943_v7, %v222_v33  ;;  %vm1221_vm1 = vmor %vm234_vm11, %vm235_vm12 }
  0xae   :  { %v1180_v22 = vpop.eup %952  ;;  %v239_v24 = vmul.f32 %v1175_v18, %v1159_v5  ;;  %v230_v27 = vmul.f32 %v1167_v14, %v229_v21  ;;  %vm245_vm14 = vweird.f32 %v1175_v18  ;;  %vm255_vm0 = vweird.f32 %v1171_v16 }
  0xaf   :  { %v173_v26 = vmul.f32 0.5, %v172_v20  ;;  %v181_v28 = vmul.f32 %v1180_v22, %v1163_v9  ;;  %v250_v29 = vmul.f32 %v1171_v16, %v249_v23  ;;  %v227_v51 = vsel %vm226_vm10, %v943_v7, %v223_v42  ;;  %vm246_vm2 = vmor %vm244_vm13, %vm245_vm14 }
  0xb0   :  { %v240_v30 = vmul.f32 %v1175_v18, %v239_v24  ;;  %v231_v35 = vmul.f32 0.5, %v230_v27  ;;  %vm187_vm4 = vweird.f32 %v1180_v22  ;;  %vm256_vm5 = vmor %vm254_vm15, %vm255_vm0  ;;  %v1230_v2 = vand.u32 127, %v1888_v55 }
  0xb1   :  { %v174_v32 = vsub.f32 1.5, %v173_v26  ;;  %v182_v36 = vmul.f32 %v1180_v22, %v181_v28  ;;  %v251_v37 = vmul.f32 0.5, %v250_v29  ;;  %vm1236_vm6 = vmor %vm186_vm3, %vm187_vm4  ;;  %vm196_vm7 = vweird.f32 %v1169_v15 }
  0xb2   :  { %113 = vadd.xlane.f32.xlu0 %v112_v58  ;;  %116 = vadd.xlane.f32.xlu1 %v115_v59  ;;  %v1192_v31 = vpop.eup %954  ;;  %v241_v38 = vmul.f32 0.5, %v240_v30  ;;  %v232_v44 = vsub.f32 1.5, %v231_v35  ;;  %1904 = vst [vmem:[#allocation17_spill] sm:$0xff] %v1230_v2  ;;  %vm1886_vm11 = vcmask 1041409   ;;  %vm1885_vm12 = vcmask 1042434  }
  0xb3   :  { %v1194_v34 = vpop.eup %956  ;;  %v191_v39 = vmul.f32 %v1192_v31, %v1169_v15  ;;  %v175_v41 = vmul.f32 %v945_v8, %v174_v32  ;;  %v183_v43 = vmul.f32 0.5, %v182_v36  ;;  %v252_v46 = vsub.f32 1.5, %v251_v37 }
  0xb4   :  { %v201_v40 = vmul.f32 %v1194_v34, %v1173_v17  ;;  %v242_v45 = vsub.f32 1.5, %v241_v38  ;;  %v233_v60 = vmul.f32 %v1167_v14, %v232_v44  ;;  %vm197_vm8 = vweird.f32 %v1192_v31 }
  0xb5   :  { %v192_v47 = vmul.f32 %v1192_v31, %v191_v39  ;;  %v179_v49 = vsel %vm178_vm9, %v945_v8, %v175_v41  ;;  %v184_v57 = vsub.f32 1.5, %v183_v43  ;;  %v253_v62 = vmul.f32 %v1171_v16, %v252_v46  ;;  %vm198_vm14 = vmor %vm196_vm7, %vm197_vm8 }
  0xb6   :  { %v202_v48 = vmul.f32 %v1194_v34, %v201_v40  ;;  %v243_v59 = vmul.f32 %v1175_v18, %v242_v45  ;;  %v237_v4 = vsel %vm1221_vm1, %v1167_v14, %v233_v60  ;;  %vm206_vm9 = vweird.f32 %v1173_v17 }
  0xb7   :  { %v193_v63 = vmul.f32 0.5, %v192_v47  ;;  %v185_v1 = vmul.f32 %v1180_v22, %v184_v57  ;;  %v257_v8 = vsel %vm256_vm5, %v1171_v16, %v253_v62  ;;  %vm207_vm10 = vweird.f32 %v1194_v34 }
  0xb8   :  { %v203_v0 = vmul.f32 0.5, %v202_v48  ;;  %v247_v3 = vsel %vm246_vm2, %v1175_v18, %v243_v59  ;;  %vm1884_vm13 = vcmask 1043459   ;;  %vm208_vm15 = vmor %vm206_vm9, %vm207_vm10  ;;  %v1899_v42 = vmov 0  }
  0xb9   :  { %v194_v11 = vsub.f32 1.5, %v193_v63  ;;  %v189_v18 = vsel %vm1236_vm6, %v1180_v22, %v185_v1  ;;  %vm1887_vm0 = vcmask 31744  }
  0xba   :  { %v204_v10 = vsub.f32 1.5, %v203_v0 }
  0xbb   :  { %v195_v17 = vmul.f32 %v1192_v31, %v194_v11 }
  0xbc   :  { %v205_v23 = vmul.f32 %v1194_v34, %v204_v10 }
  0xbd   :  { %v199_v30 = vsel %vm198_vm14, %v1192_v31, %v195_v17 }
  0xbe   :  { %v209_v29 = vsel %vm208_vm15, %v1194_v34, %v205_v23 }
 0x115   :  { %v108_v50 = vpop.xlane.xlu1 %107  ;;  %v140_v52 = vpop.xlane.xlu0 %139 }
 0x116   :  { %v1205_v53 = vmul.f32 %v179_v49, %v108_v50  ;;  %v1207_v54 = vmul.f32 %v227_v51, %v140_v52 }
 0x117   :  { %v146_v56 = vpop.xlane.xlu2 %145 }
 0x118   :  { %1900 = vst [vmem:[#allocation15_spill] sm:$0xff] %v1205_v53  ;;  %v1240_v6 = vmul.f32 %v247_v3, %v146_v56  ;;  %v315_v16 = vperm.slane %v1207_v54, %v1230_v2  ;;  %v268_v36 = vperm.slane %v1205_v53, %v1230_v2 }
 0x119   :  { %1901 = vst [vmem:[#allocation16_spill] sm:$0xff] %v1207_v54 }
 0x11a   :  { %1907 = vst [vmem:[#allocation18_spill] sm:$0xff] %v1240_v6  ;;  %v317_v21 = vperm.slane %v1240_v6, %v1230_v2 }
 0x11d   :  { %v143_v7 = vpop.xlane.xlu1 %142  ;;  %v149_v9 = vpop.xlane.xlu0 %148 }
 0x11e   :  { %v1243_v12 = vmul.f32 %v237_v4, %v143_v7  ;;  %v1245_v13 = vmul.f32 %v257_v8, %v149_v9 }
 0x11f   :  { %v111_v14 = vpop.xlane.xlu2 %110 }
 0x120   :  { %1908 = vst [vmem:[#allocation19_spill] sm:$0xff] %v1243_v12  ;;  %v316_v19 = vperm.slane %v1243_v12, %v1230_v2  ;;  %v1258_v20 = vmul.f32 %v189_v18, %v111_v14  ;;  %v318_v22 = vperm.slane %v1245_v13, %v1230_v2 }
 0x121   :  { %1909 = vst [vmem:[#allocation20_spill] sm:$0xff] %v1245_v13 }
 0x122   :  { %1910 = vst [vmem:[#allocation21_spill] sm:$0xff] %v1258_v20  ;;  %v319_v25 = vsel %vm1886_vm11, %v316_v19, %v315_v16  ;;  %v269_v28 = vperm.slane %v1258_v20, %v1230_v2 }
 0x123   :  { %v320_v26 = vsel %vm1885_vm12, %v317_v21, %v319_v25 }
 0x124   :  { %v321_v27 = vsel %vm1884_vm13, %v318_v22, %v320_v26  ;;  %v273_v39 = vsel %vm1886_vm11, %v269_v28, %v268_v36 }
 0x125   :  { %v117_v15 = vpop.xlane.xlu1 %116  ;;  %323 = vxpose.xlu2.b32.start.end [1/1] (short) (narrow) %v321_v27, 8  ;;  %v114_v32 = vpop.xlane.xlu0 %113 }
 0x126   :  { %v1277_v33 = vmul.f32 %v209_v29, %v117_v15  ;;  %v1279_v35 = vmul.f32 %v199_v30, %v114_v32 }
 0x128   :  { %1911 = vst [vmem:[#allocation22_spill] sm:$0xff] %v1277_v33  ;;  %v271_v37 = vperm.slane %v1277_v33, %v1230_v2  ;;  %v270_v34 = vperm.slane %v1279_v35, %v1230_v2 }
 0x129   :  { %1912 = vst [vmem:[#allocation23_spill] sm:$0xff] %v1279_v35 }
 0x12a   :  { %v275_v40 = vsel %vm1885_vm12, %v270_v34, %v273_v39 }
 0x12b   :  { %v277_v41 = vsel %vm1884_vm13, %v271_v37, %v275_v40 }
 0x12c   :  { %279 = vxpose.xlu0.b32.start.end [1/1] (short) (narrow) %v277_v41, 8 }
 0x187   :  { %937 = vset.pattern.permute.xlu2 %v1899_v42 }
 0x193   :  { %938 = vset.pattern.permute.xlu0 %v1899_v42 }
 0x1be   :  { %v339_v43 = vpop.trf.xlu2 }
 0x1bf   :  { %v356_v44 = vrot.slane %v339_v43, 1  ;;  %v357_v45 = vrot.slane %v339_v43, 2  ;;  %v358_v46 = vrot.slane %v339_v43, 3  ;;  %v359_v47 = vrot.slane %v339_v43, 4 }
 0x1c0   :  { %v360_v48 = vrot.slane %v339_v43, 5  ;;  %v361_v49 = vrot.slane %v339_v43, 6  ;;  %v362_v50 = vrot.slane %v339_v43, 7  ;;  %v363_v62 = vperm.slane %v339_v43, 0 }
 0x1c1   :  { %v364_v51 = vperm.slane %v356_v44, 0  ;;  %v365_v52 = vperm.slane %v357_v45, 0  ;;  %v366_v56 = vperm.slane %v358_v46, 0  ;;  %v367_v57 = vperm.slane %v359_v47, 0 }
 0x1c2   :  { %v368_v59 = vperm.slane %v360_v48, 0  ;;  %v369_v60 = vperm.slane %v361_v49, 0  ;;  %v370_v61 = vperm.slane %v362_v50, 0 }
 0x1d0   :  { %v295_v63 = vpop.trf.xlu0 }
 0x1d1   :  { %vm379_vm1 = vcmp.gt.f32.partialorder %v363_v62, %v295_v63  ;;  %vm380_vm2 = vcmp.gt.f32.partialorder %v364_v51, %v295_v63  ;;  %vm381_vm3 = vcmp.gt.f32.partialorder %v365_v52, %v295_v63  ;;  %vm382_vm4 = vcmp.gt.f32.partialorder %v366_v56, %v295_v63 }
 0x1d2   :  { %vm383_vm5 = vcmp.gt.f32.partialorder %v367_v57, %v295_v63  ;;  %vm384_vm6 = vcmp.gt.f32.partialorder %v368_v59, %v295_v63  ;;  %vm385_vm7 = vcmp.gt.f32.partialorder %v369_v60, %v295_v63  ;;  %vm386_vm8 = vcmp.gt.f32.partialorder %v370_v61, %v295_v63 }
 0x1d3   :  { %v387_v0 = vsel %vm379_vm1, 1, %v1899_v42  ;;  %v388_v1 = vsel %vm380_vm2, 1, %v1899_v42  ;;  %v389_v3 = vsel %vm381_vm3, 1, %v1899_v42  ;;  %v390_v4 = vsel %vm382_vm4, 1, %v1899_v42 }
 0x1d4   :  { %v391_v5 = vsel %vm383_vm5, 1, %v1899_v42  ;;  %v392_v7 = vsel %vm384_vm6, 1, %v1899_v42  ;;  %v393_v8 = vsel %vm385_vm7, 1, %v1899_v42  ;;  %v394_v9 = vsel %vm386_vm8, 1, %v1899_v42 }
 0x1d5   :  { %v396_v10 = vsel %vm1887_vm0, %v387_v0, 0  ;;  %v403_v11 = vsel %vm1887_vm0, %v388_v1, 0  ;;  %v410_v14 = vsel %vm1887_vm0, %v389_v3, 0  ;;  %v417_v18 = vsel %vm1887_vm0, %v390_v4, 0 }
 0x1d6   :  { %v397_v16 = vrot.slane %v396_v10, 4  ;;  %v404_v19 = vrot.slane %v403_v11, 4  ;;  %v411_v21 = vrot.slane %v410_v14, 4  ;;  %v418_v23 = vrot.slane %v417_v18, 4 }
 0x1d7   :  { %v424_v17 = vsel %vm1887_vm0, %v391_v5, 0  ;;  %v431_v22 = vsel %vm1887_vm0, %v392_v7, 0  ;;  %v438_v25 = vsel %vm1887_vm0, %v393_v8, 0  ;;  %v445_v26 = vsel %vm1887_vm0, %v394_v9, 0 }
 0x1d8   :  { %v398_v27 = vadd.s32 %v397_v16, %v396_v10  ;;  %v405_v28 = vadd.s32 %v404_v19, %v403_v11  ;;  %v412_v29 = vadd.s32 %v411_v21, %v410_v14  ;;  %v419_v15 = vadd.s32 %v418_v23, %v417_v18 }
 0x1d9   :  { %v425_v30 = vrot.slane %v424_v17, 4  ;;  %v432_v32 = vrot.slane %v431_v22, 4  ;;  %v439_v36 = vrot.slane %v438_v25, 4  ;;  %v446_v37 = vrot.slane %v445_v26, 4 }
 0x1da   :  { %v399_v34 = vrot.slane %v398_v27, 2  ;;  %v406_v39 = vrot.slane %v405_v28, 2  ;;  %v413_v40 = vrot.slane %v412_v29, 2  ;;  %v420_v41 = vrot.slane %v419_v15, 2 }
 0x1db   :  { %v426_v43 = vadd.s32 %v425_v30, %v424_v17  ;;  %v433_v44 = vadd.s32 %v432_v32, %v431_v22  ;;  %v440_v45 = vadd.s32 %v439_v36, %v438_v25  ;;  %v447_v46 = vadd.s32 %v446_v37, %v445_v26 }
 0x1dc   :  { %v400_v51 = vadd.s32 %v399_v34, %v398_v27  ;;  %v407_v52 = vadd.s32 %v406_v39, %v405_v28  ;;  %v414_v56 = vadd.s32 %v413_v40, %v412_v29  ;;  %v421_v57 = vadd.s32 %v420_v41, %v419_v15 }
 0x1dd   :  { %v427_v47 = vrot.slane %v426_v43, 2  ;;  %v434_v48 = vrot.slane %v433_v44, 2  ;;  %v441_v49 = vrot.slane %v440_v45, 2  ;;  %v448_v50 = vrot.slane %v447_v46, 2 }
 0x1de   :  { %v401_v63 = vrot.slane %v400_v51, 1  ;;  %v408_v0 = vrot.slane %v407_v52, 1  ;;  %v415_v1 = vrot.slane %v414_v56, 1  ;;  %v422_v3 = vrot.slane %v421_v57, 1 }
 0x1df   :  { %v428_v59 = vadd.s32 %v427_v47, %v426_v43  ;;  %v435_v60 = vadd.s32 %v434_v48, %v433_v44  ;;  %v442_v61 = vadd.s32 %v441_v49, %v440_v45  ;;  %v449_v62 = vadd.s32 %v448_v50, %v447_v46 }
 0x1e0   :  { %v1312_v9 = vadd.s32 %v401_v63, %v400_v51  ;;  %v1314_v10 = vadd.s32 %v408_v0, %v407_v52  ;;  %v1316_v11 = vadd.s32 %v415_v1, %v414_v56  ;;  %v1318_v14 = vadd.s32 %v422_v3, %v421_v57 }
 0x1e1   :  { %v429_v4 = vrot.slane %v428_v59, 1  ;;  %v436_v5 = vrot.slane %v435_v60, 1  ;;  %v443_v7 = vrot.slane %v442_v61, 1  ;;  %v450_v8 = vrot.slane %v449_v62, 1 }
 0x1e2   :  { %vm452_vm9 = vcmp.ge.s32.totalorder %v1312_v9, 1  ;;  %vm453_vm10 = vcmp.ge.s32.totalorder %v1314_v10, 1  ;;  %vm454_vm14 = vcmp.ge.s32.totalorder %v1316_v11, 1  ;;  %vm455_vm15 = vcmp.ge.s32.totalorder %v1318_v14, 1 }
 0x1e3   :  { %v1320_v18 = vadd.s32 %v429_v4, %v428_v59  ;;  %v1322_v16 = vadd.s32 %v436_v5, %v435_v60  ;;  %v1324_v19 = vadd.s32 %v443_v7, %v442_v61  ;;  %v1326_v21 = vadd.s32 %v450_v8, %v449_v62 }
 0x1e4   :  { %vm492_vm7 = vcmp.ge.s32.totalorder %v1312_v9, 6  ;;  %v1377_v23 = vsel %vm452_vm9, 1, %v1899_v42  ;;  %v1382_v17 = vsel %vm453_vm10, 1, %v1899_v42  ;;  %vm500_vm12 = vcmp.ge.s32.totalorder %v1312_v9, 7 }
 0x1e5   :  { %vm456_vm1 = vcmp.ge.s32.totalorder %v1320_v18, 1  ;;  %vm457_vm2 = vcmp.ge.s32.totalorder %v1322_v16, 1  ;;  %vm488_vm3 = vcmp.ge.s32.totalorder %v1320_v18, 5  ;;  %vm489_vm4 = vcmp.ge.s32.totalorder %v1322_v16, 5 }
 0x1e6   :  { %vm490_vm5 = vcmp.ge.s32.totalorder %v1324_v19, 5  ;;  %vm491_vm6 = vcmp.ge.s32.totalorder %v1326_v21, 5  ;;  %vm497_vm0 = vcmp.ge.s32.totalorder %v1322_v16, 6  ;;  %vm498_vm8 = vcmp.ge.s32.totalorder %v1324_v19, 6 }
 0x1e7   :  { %vm499_vm13 = vcmp.ge.s32.totalorder %v1326_v21, 6  ;;  %v1391_v22 = vsel %vm454_vm14, 1, %v1899_v42  ;;  %v1396_v25 = vsel %vm455_vm15, 1, %v1899_v42  ;;  %v1401_v26 = vsel %vm456_vm1, 1, %v1899_v42 }
 0x1e8   :  { %v1406_v27 = vsel %vm457_vm2, 1, %v1899_v42  ;;  %vm502_vm9 = vcmp.ge.s32.totalorder %v1316_v11, 7  ;;  %vm1913_vm15 = vcmp.ge.s32.totalorder %v1324_v19, 1  ;;  %vm1914_vm1 = vcmp.ge.s32.totalorder %v1326_v21, 1 }
 0x1e9   :  { %v1415_v28 = vsel %vm1913_vm15, 1, %v1899_v42  ;;  %v1420_v29 = vsel %vm1914_vm1, 1, %v1899_v42  ;;  %vm1915_vm2 = vcmp.ge.s32.totalorder %v1312_v9, 2  ;;  %vm1916_vm14 = vcmp.ge.s32.totalorder %v1314_v10, 2 }
 0x1ea   :  { %v1425_v15 = vsel %vm1915_vm2, 1, %v1899_v42  ;;  %v1430_v30 = vsel %vm1916_vm14, 1, %v1899_v42  ;;  %vm1917_vm10 = vcmp.ge.s32.totalorder %v1316_v11, 2  ;;  %vm1918_vm1 = vcmp.ge.s32.totalorder %v1318_v14, 2 }
 0x1eb   :  { %v1437_v32 = vsel %vm1917_vm10, 1, %v1899_v42  ;;  %v1442_v36 = vsel %vm1918_vm1, 1, %v1899_v42  ;;  %vm1919_vm2 = vcmp.ge.s32.totalorder %v1320_v18, 2  ;;  %vm1920_vm14 = vcmp.ge.s32.totalorder %v1322_v16, 2 }
 0x1ec   :  { %v1447_v37 = vsel %vm1919_vm2, 1, %v1899_v42  ;;  %v1452_v34 = vsel %vm1920_vm14, 1, %v1899_v42  ;;  %vm1921_vm1 = vcmp.ge.s32.totalorder %v1324_v19, 2  ;;  %vm1922_vm2 = vcmp.ge.s32.totalorder %v1326_v21, 2 }
 0x1ed   :  { %v1460_v39 = vsel %vm1921_vm1, 1, %v1899_v42  ;;  %v1465_v40 = vsel %vm1922_vm2, 1, %v1899_v42  ;;  %vm1923_vm14 = vcmp.ge.s32.totalorder %v1312_v9, 3  ;;  %vm1924_vm15 = vcmp.ge.s32.totalorder %v1314_v10, 3 }
 0x1ee   :  { %v532_v41 = vsel %vm1923_vm14, 1, %v1899_v42  ;;  %v1473_v43 = vsel %vm1924_vm15, 1, %v1899_v42  ;;  %vm1925_vm1 = vcmp.ge.s32.totalorder %v1316_v11, 3  ;;  %vm1926_vm2 = vcmp.ge.s32.totalorder %v1318_v14, 3 }
 0x1ef   :  { %v1479_v44 = vsel %vm1925_vm1, 1, %v1899_v42  ;;  %v1484_v45 = vsel %vm1926_vm2, 1, %v1899_v42  ;;  %vm1927_vm14 = vcmp.ge.s32.totalorder %v1320_v18, 3  ;;  %vm1928_vm15 = vcmp.ge.s32.totalorder %v1322_v16, 3 }
 0x1f0   :  { %v1489_v46 = vsel %vm1927_vm14, 1, %v1899_v42  ;;  %v1494_v47 = vsel %vm1928_vm15, 1, %v1899_v42  ;;  %vm512_vm11 = vcmp.ge.s32.totalorder %v1320_v18, 8  ;;  %vm1929_vm10 = vcmp.ge.s32.totalorder %v1324_v19, 3 }
 0x1f1   :  { %v1501_v48 = vsel %vm1929_vm10, 1, %v1899_v42  ;;  %vm1930_vm2 = vcmp.ge.s32.totalorder %v1326_v21, 3  ;;  %vm1931_vm14 = vcmp.ge.s32.totalorder %v1312_v9, 4  ;;  %vm1932_vm15 = vcmp.ge.s32.totalorder %v1314_v10, 4 }
 0x1f2   :  { %v1506_v49 = vsel %vm1930_vm2, 1, %v1899_v42  ;;  %v1511_v50 = vsel %vm1931_vm14, 1, %v1899_v42  ;;  %v1516_v51 = vsel %vm1932_vm15, 1, %v1899_v42  ;;  %vm1933_vm10 = vcmp.ge.s32.totalorder %v1316_v11, 4 }
 0x1f3   :  { %v1522_v52 = vsel %vm1933_vm10, 1, %v1899_v42  ;;  %vm1934_vm2 = vcmp.ge.s32.totalorder %v1318_v14, 4  ;;  %vm1935_vm14 = vcmp.ge.s32.totalorder %v1320_v18, 4  ;;  %vm1936_vm15 = vcmp.ge.s32.totalorder %v1322_v16, 4 }
 0x1f4   :  { %v1527_v56 = vsel %vm1934_vm2, 1, %v1899_v42  ;;  %v1532_v57 = vsel %vm1935_vm14, 1, %v1899_v42  ;;  %v1537_v59 = vsel %vm1936_vm15, 1, %v1899_v42  ;;  %vm1937_vm10 = vcmp.ge.s32.totalorder %v1324_v19, 4 }
 0x1f5   :  { %v1543_v60 = vsel %vm1937_vm10, 1, %v1899_v42  ;;  %vm1938_vm2 = vcmp.ge.s32.totalorder %v1326_v21, 4  ;;  %vm1939_vm14 = vcmp.ge.s32.totalorder %v1312_v9, 5  ;;  %vm1940_vm15 = vcmp.ge.s32.totalorder %v1314_v10, 5 }
 0x1f6   :  { %v1548_v61 = vsel %vm1938_vm2, 1, %v1899_v42  ;;  %v1553_v62 = vsel %vm1939_vm14, 1, %v1899_v42  ;;  %v1558_v63 = vsel %vm1940_vm15, 1, %v1899_v42  ;;  %vm1941_vm1 = vcmp.ge.s32.totalorder %v1316_v11, 5 }
 0x1f7   :  { %v1563_v0 = vsel %vm1941_vm1, 1, %v1899_v42  ;;  %vm1942_vm10 = vcmp.ge.s32.totalorder %v1318_v14, 5  ;;  %v1573_v3 = vsel %vm488_vm3, 1, %v1899_v42  ;;  %v1578_v4 = vsel %vm489_vm4, 1, %v1899_v42 }
 0x1f8   :  { %v1568_v1 = vsel %vm1942_vm10, 1, %v1899_v42  ;;  %v1583_v5 = vsel %vm490_vm5, 1, %v1899_v42  ;;  %v1588_v7 = vsel %vm491_vm6, 1, %v1899_v42  ;;  %v1593_v8 = vsel %vm492_vm7, 1, %v1899_v42 }
 0x1f9   :  { %vm1943_vm3 = vcmp.ge.s32.totalorder %v1314_v10, 6  ;;  %vm1944_vm4 = vcmp.ge.s32.totalorder %v1316_v11, 6  ;;  %vm1945_vm5 = vcmp.ge.s32.totalorder %v1318_v14, 6  ;;  %vm1946_vm6 = vcmp.ge.s32.totalorder %v1320_v18, 6 }
 0x1fa   :  { %v1598_v38 = vsel %vm1943_vm3, 1, %v1899_v42  ;;  %v1603_v58 = vsel %vm1944_vm4, 1, %v1899_v42  ;;  %v1608_v24 = vsel %vm1945_vm5, 1, %v1899_v42  ;;  %v1613_v31 = vsel %vm1946_vm6, 1, %v1899_v42 }
 0x1fb   :  { %v1618_v55 = vsel %vm497_vm0, 1, %v1899_v42  ;;  %v1623_v2 = vsel %vm498_vm8, 1, %v1899_v42  ;;  %v1628_v33 = vsel %vm499_vm13, 1, %v1899_v42  ;;  %v1633_v13 = vsel %vm500_vm12, 1, %v1899_v42 }
 0x1fc   :  { %1947 = vst [vmem:[#allocation24_spill] sm:$0xff] %v1623_v2  ;;  %vm1949_vm7 = vcmp.ge.s32.totalorder %v1314_v10, 7  ;;  %v1643_v54 = vsel %vm502_vm9, 1, %v1899_v42  ;;  %vm1950_vm0 = vcmp.ge.s32.totalorder %v1318_v14, 7  ;;  %vm1952_vm13 = vcmp.ge.s32.totalorder %v1320_v18, 7 }
 0x1fd   :  { %1948 = vst [vmem:[#allocation25_spill] sm:$0xff] %v1628_v33  ;;  %v1638_v53 = vsel %vm1949_vm7, 1, %v1899_v42  ;;  %v1648_v20 = vsel %vm1950_vm0, 1, %v1899_v42  ;;  %v1653_v12 = vsel %vm1952_vm13, 1, %v1899_v42  ;;  %vm1954_vm12 = vcmp.ge.s32.totalorder %v1322_v16, 7 }
 0x1fe   :  { %1951 = vst [vmem:[#allocation26_spill] sm:$0xff] %v1648_v20  ;;  %v1658_v35 = vsel %vm1954_vm12, 1, %v1899_v42  ;;  %vm1956_vm8 = vcmp.ge.s32.totalorder %v1324_v19, 7  ;;  %vm1958_vm9 = vcmp.ge.s32.totalorder %v1326_v21, 7  ;;  %vm1960_vm1 = vcmask 31744  }
 0x1ff   :  { %1953 = vst [vmem:[#allocation27_spill] sm:$0xff] %v1653_v12  ;;  %v1663_v6 = vsel %vm1956_vm8, 1, %v1899_v42  ;;  %v1668_v33 = vsel %vm1958_vm9, 1, %v1899_v42  ;;  %v580_v2 = vsel %vm1960_vm1, %v1377_v23, 0  ;;  %vm1961_vm2 = vmmov %vm1960_vm1  ;;  %vm1962_vm14 = vcmp.ge.s32.totalorder %v1312_v9, 8 }
 0x200   :  { %1955 = vst [vmem:[#allocation28_spill] sm:$0xff] %v1658_v35  ;;  %v581_v12 = vsel %vm1961_vm2, %v1382_v17, 0  ;;  %v1677_v35 = vsel %vm1962_vm14, 1, %v1899_v42  ;;  %vm1963_vm15 = vcmp.ge.s32.totalorder %v1314_v10, 8  ;;  %vm1964_vm10 = vcmp.ge.s32.totalorder %v1316_v11, 8  ;;  %vm1966_vm4 = vmmov %vm1960_vm1 }
 0x201   :  { %1957 = vst [vmem:[#allocation29_spill] sm:$0xff] %v1663_v6  ;;  %v1682_v6 = vsel %vm1963_vm15, 1, %v1899_v42  ;;  %v582_v20 = vadd.s32 %v581_v12, %v580_v2  ;;  %vm1965_vm3 = vcmp.ge.s32.totalorder %v1318_v14, 8  ;;  %v583_v9 = vsel %vm1966_vm4, %v1391_v22, 0  ;;  %vm1967_vm5 = vmmov %vm1960_vm1 }
 0x202   :  { %1959 = vst [vmem:[#allocation30_spill] sm:$0xff] %v1668_v33  ;;  %v1687_v33 = vsel %vm1964_vm10, 1, %v1899_v42  ;;  %v1692_v23 = vsel %vm1965_vm3, 1, %v1899_v42  ;;  %v595_v17 = vsel %vm1967_vm5, %v1425_v15, 0  ;;  %vm1968_vm6 = vmmov %vm1960_vm1  ;;  %v1703_v11 = vsel %vm512_vm11, 1, %v1899_v42 }
 0x203   :  { %v596_v10 = vsel %vm1968_vm6, %v1430_v30, 0  ;;  %vm1969_vm7 = vcmp.ge.s32.totalorder %v1322_v16, 8  ;;  %v584_v12 = vadd.s32 %v583_v9, %v582_v20  ;;  %vm1970_vm0 = vcmp.ge.s32.totalorder %v1324_v19, 8  ;;  %vm1971_vm13 = vmmov %vm1960_vm1 }
 0x204   :  { %v1708_v2 = vsel %vm1969_vm7, 1, %v1899_v42  ;;  %v597_v14 = vadd.s32 %v596_v10, %v595_v17  ;;  %v1713_v22 = vsel %vm1970_vm0, 1, %v1899_v42  ;;  %v585_v15 = vsel %vm1971_vm13, %v1396_v25, 0  ;;  %vm1972_vm12 = vmmov %vm1960_vm1 }
 0x205   :  { %v598_v18 = vsel %vm1972_vm12, %v1437_v32, 0  ;;  %vm1973_vm11 = vmmov %vm1960_vm1  ;;  %vm1974_vm8 = vcmp.ge.s32.totalorder %v1326_v21, 8  ;;  %v586_v20 = vadd.s32 %v585_v15, %v584_v12  ;;  %v587_v17 = vsel %vm1960_vm1, %v1401_v26, 0 }
 0x206   :  { %v610_v30 = vsel %vm1973_vm11, %v532_v41, 0  ;;  %v1723_v16 = vsel %vm1974_vm8, 1, %v1899_v42  ;;  %v599_v9 = vadd.s32 %v598_v18, %v597_v14  ;;  %vm1975_vm9 = vmmov %vm1960_vm1 }
 0x207   :  { %v611_v19 = vsel %vm1975_vm9, %v1473_v43, 0  ;;  %vm1976_vm2 = vmmov %vm1960_vm1  ;;  %v588_v10 = vadd.s32 %v587_v17, %v586_v20 }
 0x208   :  { %v589_v25 = vsel %vm1976_vm2, %v1406_v27, 0  ;;  %vm1977_vm14 = vmmov %vm1960_vm1  ;;  %v612_v41 = vadd.s32 %v611_v19, %v610_v30 }
 0x209   :  { %v600_v32 = vsel %vm1977_vm14, %v1442_v36, 0  ;;  %vm1978_vm15 = vmmov %vm1960_vm1  ;;  %v590_v30 = vadd.s32 %v589_v25, %v588_v10 }
 0x20a   :  { %v591_v21 = vsel %vm1978_vm15, %v1415_v28, 0  ;;  %v601_v42 = vadd.s32 %v600_v32, %v599_v9  ;;  %vm1979_vm10 = vmmov %vm1960_vm1 }
 0x20b   :  { %v613_v12 = vsel %vm1979_vm10, %v1479_v44, 0  ;;  %vm1980_vm3 = vmmov %vm1960_vm1  ;;  %v592_v25 = vadd.s32 %v591_v21, %v590_v30 }
 0x20c   :  { %v602_v43 = vsel %vm1980_vm3, %v1447_v37, 0  ;;  %v614_v14 = vadd.s32 %v613_v12, %v612_v41  ;;  %vm1981_vm4 = vmmov %vm1960_vm1 }
 0x20d   :  { %v625_v26 = vsel %vm1981_vm4, %v1511_v50, 0  ;;  %vm1982_vm5 = vmmov %vm1960_vm1  ;;  %v603_v15 = vadd.s32 %v602_v43, %v601_v42 }
 0x20e   :  { %v626_v27 = vsel %vm1982_vm5, %v1516_v51, 0  ;;  %vm1983_vm6 = vmmov %vm1960_vm1 }
 0x20f   :  { %v593_v36 = vsel %vm1983_vm6, %v1420_v29, 0  ;;  %vm1984_vm7 = vmmov %vm1960_vm1  ;;  %v627_v18 = vadd.s32 %v626_v27, %v625_v26 }
 0x210   :  { %v615_v28 = vsel %vm1984_vm7, %v1484_v45, 0  ;;  %vm1985_vm0 = vmmov %vm1960_vm1 }
 0x211   :  { %v604_v44 = vsel %vm1985_vm0, %v1452_v34, 0  ;;  %v616_v37 = vadd.s32 %v615_v28, %v614_v14  ;;  %vm1986_vm13 = vmmov %vm1985_vm0  ;;  %v1783_v14 = vadd.s32 %v593_v36, %v592_v25 }
 0x212   :  { %v628_v20 = vsel %vm1986_vm13, %v1522_v52, 0  ;;  %vm1987_vm12 = vmmov %vm1985_vm0  ;;  %v605_v19 = vadd.s32 %v604_v44, %v603_v15 }
 0x213   :  { %v606_v50 = vsel %vm1987_vm12, %v1460_v39, 0  ;;  %vm1988_vm11 = vmmov %vm1985_vm0  ;;  %v629_v29 = vadd.s32 %v628_v20, %v627_v18 }
 0x214   :  { %v608_v51 = vsel %vm1988_vm11, %v1465_v40, 0  ;;  %vm1989_vm8 = vmmov %vm1985_vm0  ;;  %v607_v12 = vadd.s32 %v606_v50, %v605_v19  ;;  %v2019_v19 = vld [vmem:[#allocation25_spill] sm:$0xff] }
 0x215   :  { %v617_v42 = vsel %vm1989_vm8, %v1489_v46, 0  ;;  %vm1990_vm9 = vmmov %vm1985_vm0 }
 0x216   :  { %v618_v45 = vadd.s32 %v617_v42, %v616_v37  ;;  %v630_v9 = vsel %vm1990_vm9, %v1527_v56, 0  ;;  %vm1991_vm1 = vmmov %vm1985_vm0 }
 0x217   :  { %v640_v34 = vsel %vm1991_vm1, %v1553_v62, 0  ;;  %vm1992_vm2 = vmmov %vm1985_vm0  ;;  %v631_v17 = vadd.s32 %v630_v9, %v629_v29 }
 0x218   :  { %v641_v52 = vsel %vm1992_vm2, %v1558_v63, 0  ;;  %vm1993_vm14 = vmmov %vm1985_vm0 }
 0x219   :  { %v619_v39 = vsel %vm1993_vm14, %v1494_v47, 0  ;;  %v642_v40 = vadd.s32 %v641_v52, %v640_v34  ;;  %vm1994_vm15 = vmmov %vm1985_vm0 }
 0x21a   :  { %v621_v46 = vsel %vm1994_vm15, %v1501_v48, 0  ;;  %vm1995_vm10 = vmmov %vm1985_vm0  ;;  %v620_v62 = vadd.s32 %v619_v39, %v618_v45  ;;  %v2017_v45 = vld [vmem:[#allocation24_spill] sm:$0xff]  ;;  %v2021_v39 = vld [vmem:[#allocation27_spill] sm:$0xff] }
 0x21b   :  { %v623_v32 = vsel %vm1995_vm10, %v1506_v49, 0  ;;  %vm1996_vm3 = vmmov %vm1985_vm0  ;;  %v656_v49 = vsel %vm1985_vm0, %v1598_v38, 0 }
 0x21c   :  { %v643_v56 = vsel %vm1996_vm3, %v1563_v0, 0  ;;  %vm1997_vm4 = vmmov %vm1985_vm0  ;;  %v622_v26 = vadd.s32 %v621_v46, %v620_v62  ;;  %v2025_v62 = vld [vmem:[#allocation28_spill] sm:$0xff] }
 0x21d   :  { %v632_v63 = vsel %vm1997_vm4, %v1532_v57, 0  ;;  %vm1998_vm5 = vmmov %vm1985_vm0  ;;  %v644_v47 = vadd.s32 %v643_v56, %v642_v40 }
 0x21e   :  { %v634_v41 = vsel %vm1998_vm5, %v1537_v59, 0  ;;  %v633_v10 = vadd.s32 %v632_v63, %v631_v17  ;;  %vm1999_vm6 = vmmov %vm1985_vm0 }
 0x21f   :  { %v645_v21 = vsel %vm1999_vm6, %v1568_v1, 0  ;;  %vm2000_vm7 = vmmov %vm1985_vm0 }
 0x220   :  { %v655_v48 = vsel %vm2000_vm7, %v1593_v8, 0  ;;  %vm2001_vm13 = vmmov %vm1985_vm0  ;;  %v646_v43 = vadd.s32 %v645_v21, %v644_v47 }
 0x221   :  { %v636_v0 = vsel %vm2001_vm13, %v1543_v60, 0  ;;  %v657_v57 = vadd.s32 %v656_v49, %v655_v48  ;;  %vm2002_vm12 = vmmov %vm1985_vm0  ;;  %v635_v60 = vadd.s32 %v634_v41, %v633_v10  ;;  %v2027_v41 = vld [vmem:[#allocation29_spill] sm:$0xff]  ;;  %v2030_v48 = vld [vmem:[#allocation30_spill] sm:$0xff] }
 0x222   :  { %v638_v59 = vsel %vm2002_vm12, %v1548_v61, 0  ;;  %vm2003_vm11 = vmmov %vm1985_vm0 }
 0x223   :  { %v647_v1 = vsel %vm2003_vm11, %v1573_v3, 0  ;;  %vm2004_vm8 = vmmov %vm1985_vm0  ;;  %v609_v3 = vadd.s32 %v608_v51, %v607_v12  ;;  %v637_v51 = vadd.s32 %v636_v0, %v635_v60 }
 0x224   :  { %v658_v8 = vsel %vm2004_vm8, %v1603_v58, 0  ;;  %v648_v27 = vadd.s32 %v647_v1, %v646_v43  ;;  %vm2005_vm9 = vmmov %vm1985_vm0 }
 0x225   :  { %v649_v38 = vsel %vm2005_vm9, %v1578_v4, 0  ;;  %v659_v15 = vadd.s32 %v658_v8, %v657_v57  ;;  %vm2006_vm1 = vmmov %vm1985_vm0  ;;  %v639_v56 = vadd.s32 %v638_v59, %v637_v51 }
 0x226   :  { %v660_v36 = vsel %vm2006_vm1, %v1608_v24, 0  ;;  %vm2007_vm2 = vmmov %vm1985_vm0  ;;  %v650_v44 = vadd.s32 %v649_v38, %v648_v27 }
 0x227   :  { %v670_v28 = vsel %vm2007_vm2, %v1633_v13, 0  ;;  %vm2008_vm14 = vmmov %vm1985_vm0  ;;  %v661_v18 = vadd.s32 %v660_v36, %v659_v15  ;;  %v624_v13 = vadd.s32 %v623_v32, %v622_v26 }
 0x228   :  { %v671_v61 = vsel %vm2008_vm14, %v1638_v53, 0  ;;  %vm2009_vm15 = vmmov %vm1985_vm0 }
 0x229   :  { %v651_v58 = vsel %vm2009_vm15, %v1583_v5, 0  ;;  %v672_v30 = vadd.s32 %v671_v61, %v670_v28  ;;  %vm2010_vm10 = vmmov %vm1985_vm0  ;;  %v2014_v5 = vld [vmem:[#allocation26_spill] sm:$0xff] }
 0x22a   :  { %v653_v4 = vsel %vm2010_vm10, %v1588_v7, 0  ;;  %vm2011_vm3 = vmmov %vm1985_vm0  ;;  %v686_v7 = vsel %vm1985_vm0, %v1682_v6, 0  ;;  %v652_v52 = vadd.s32 %v651_v58, %v650_v44  ;;  %v2024_v6 = vlaneseq }
 0x22b   :  { %v662_v37 = vsel %vm2011_vm3, %v1613_v31, 0  ;;  %vm2012_vm4 = vmmov %vm1985_vm0 }
 0x22c   :  { %v673_v24 = vsel %vm2012_vm4, %v1643_v54, 0  ;;  %v663_v20 = vadd.s32 %v662_v37, %v661_v18  ;;  %vm2013_vm5 = vmmov %vm1985_vm0  ;;  %v1824_v32 = vshrl.u32 %v2024_v6, 7  ;;  %v654_v0 = vadd.s32 %v653_v4, %v652_v52 }
 0x22d   :  { %v664_v53 = vsel %vm2013_vm5, %v1618_v55, 0  ;;  %v674_v50 = vadd.s32 %v673_v24, %v672_v30  ;;  %vm2015_vm6 = vmmov %vm1985_vm0  ;;  %v1092_v18 = vmov 0.0  }
 0x22e   :  { %v675_v42 = vsel %vm2015_vm6, %v2014_v5, 0  ;;  %vm2016_vm7 = vmmov %vm1985_vm0  ;;  %v665_v31 = vadd.s32 %v664_v53, %v663_v20  ;;  %v702_v12 = vadd.s32 1, %v1824_v32 }
 0x22f   :  { %v685_v29 = vsel %vm2016_vm7, %v1677_v35, 0  ;;  %vm2018_vm13 = vmmov %vm1985_vm0  ;;  %v676_v9 = vadd.s32 %v675_v42, %v674_v50 }
 0x230   :  { %v666_v54 = vsel %vm2018_vm13, %v2017_v45, 0  ;;  %v687_v34 = vadd.s32 %v686_v7, %v685_v29  ;;  %vm2020_vm12 = vmmov %vm1985_vm0  ;;  %v703_v26 = vrot.slane %v702_v12, 1  ;;  %v704_v27 = vrot.slane %v702_v12, 2 }
 0x231   :  { %v668_v55 = vsel %vm2020_vm12, %v2019_v19, 0  ;;  %vm2022_vm11 = vmmov %vm1985_vm0  ;;  %v667_v35 = vadd.s32 %v666_v54, %v665_v31  ;;  %v706_v38 = vrot.slane %v702_v12, 4  ;;  %v707_v15 = vrot.slane %v702_v12, 5 }
 0x232   :  { %v677_v17 = vsel %vm2022_vm11, %v2021_v39, 0  ;;  %vm2023_vm8 = vmmov %vm1985_vm0  ;;  %v708_v60 = vrot.slane %v702_v12, 6  ;;  %vm711_vm5 = vcmp.ge.s32.totalorder %v609_v3, %v703_v26  ;;  %vm712_vm6 = vcmp.ge.s32.totalorder %v624_v13, %v704_v27  ;;  %v2046_v26 = vld [vmem:[#allocation16_spill] sm:$0xff]  ;;  %v2047_v27 = vld [vmem:[#allocation15_spill] sm:$0xff] }
 0x233   :  { %v688_v40 = vsel %vm2023_vm8, %v1687_v33, 0  ;;  %v678_v25 = vadd.s32 %v677_v17, %v676_v9  ;;  %vm2026_vm9 = vmmov %vm1985_vm0  ;;  %v669_v43 = vadd.s32 %v668_v55, %v667_v35  ;;  %vm710_vm13 = vcmp.ge.s32.totalorder %v1783_v14, %v702_v12 }
 0x234   :  { %v689_v46 = vadd.s32 %v688_v40, %v687_v34  ;;  %v679_v63 = vsel %vm2026_vm9, %v2025_v62, 0  ;;  %vm2028_vm1 = vmmov %vm1985_vm0  ;;  %v921_v30 = vsel %vm711_vm5, 1.0, %v1092_v18  ;;  %v922_v44 = vsel %vm712_vm6, 1.0, %v1092_v18 }
 0x235   :  { %v681_v47 = vsel %vm2028_vm1, %v2027_v41, 0  ;;  %vm2029_vm2 = vmmov %vm1985_vm0  ;;  %v680_v21 = vadd.s32 %v679_v63, %v678_v25  ;;  %vm715_vm12 = vcmp.ge.s32.totalorder %v669_v43, %v707_v15  ;;  %v920_v20 = vsel %vm710_vm13, 1.0, %v1092_v18 }
 0x236   :  { %v690_v10 = vsel %vm2029_vm2, %v1692_v23, 0  ;;  %vm2031_vm14 = vmmov %vm1985_vm0  ;;  %v705_v23 = vrot.slane %v702_v12, 3  ;;  %v925_v53 = vsel %vm715_vm12, 1.0, %v1092_v18  ;;  %vm749_vm8 = vcmask 1044484  }
 0x237   :  { %v683_v33 = vsel %vm2031_vm14, %v2030_v48, 0  ;;  %v691_v49 = vadd.s32 %v690_v10, %v689_v46  ;;  %vm2032_vm15 = vmmov %vm1985_vm0  ;;  %v682_v1 = vadd.s32 %v681_v47, %v680_v21  ;;  %vm2036_vm1 = vcmask 1041409  }
 0x238   :  { %v692_v57 = vsel %vm2032_vm15, %v1703_v11, 0  ;;  %vm2033_vm10 = vmmov %vm1985_vm0  ;;  %vm713_vm7 = vcmp.ge.s32.totalorder %v639_v56, %v705_v23  ;;  %vm2037_vm2 = vcmask 1042434   ;;  %vm752_vm14 = vcmask 1045509  }
 0x239   :  { %v694_v59 = vsel %vm2033_vm10, %v1708_v2, 0  ;;  %v693_v8 = vadd.s32 %v692_v57, %v691_v49  ;;  %v684_v36 = vadd.s32 %v683_v33, %v682_v1  ;;  %vm2034_vm3 = vmmov %vm1985_vm0  ;;  %v709_v2 = vrot.slane %v702_v12, 7  ;;  %v2040_v49 = vld [vmem:[#allocation18_spill] sm:$0xff]  ;;  %v2041_v12 = vld [vmem:[#allocation23_spill] sm:$0xff] }
 0x23a   :  { %v696_v61 = vsel %vm2034_vm3, %v1713_v22, 0  ;;  %vm2035_vm4 = vmmov %vm1985_vm0  ;;  %vm714_vm0 = vcmp.ge.s32.totalorder %v654_v0, %v706_v38  ;;  %v923_v4 = vsel %vm713_vm7, 1.0, %v1092_v18  ;;  %v742_v22 = vrot.slane %v921_v30, 7  ;;  %v2043_v57 = vld [vmem:[#allocation19_spill] sm:$0xff] }
 0x23b   :  { %v695_v28 = vadd.s32 %v694_v59, %v693_v8  ;;  %v698_v58 = vsel %vm2035_vm4, %v1723_v16, 0  ;;  %vm716_vm11 = vcmp.ge.s32.totalorder %v684_v36, %v708_v60  ;;  %v924_v24 = vsel %vm714_vm0, 1.0, %v1092_v18  ;;  %v2044_v59 = vld [vmem:[#allocation21_spill] sm:$0xff]  ;;  %vm2053_vm7 = vmmov %vm2036_vm1 }
 0x23c   :  { %v744_v16 = vrot.slane %v922_v44, 6  ;;  %v926_v3 = vsel %vm716_vm11, 1.0, %v1092_v18  ;;  %v743_v13 = vsel %vm2036_vm1, %v742_v22, %v920_v20  ;;  %v746_v50 = vrot.slane %v923_v4, 5  ;;  %vm2054_vm13 = vmmov %vm2037_vm2 }
 0x23d   :  { %v697_v11 = vadd.s32 %v696_v61, %v695_v28  ;;  %v748_v5 = vrot.slane %v924_v24, 4  ;;  %vm2038_vm15 = vcmask 1043459   ;;  %v751_v29 = vrot.slane %v925_v53, 3 }
 0x23e   :  { %v745_v14 = vsel %vm2037_vm2, %v744_v16, %v743_v13  ;;  %vm755_vm10 = vcmask 1046534   ;;  %v754_v31 = vrot.slane %v926_v3, 2  ;;  %vm758_vm3 = vcmask 1047559   ;;  %v2052_v13 = vld [vmem:[#allocation17_spill] sm:$0xff]  ;;  %vm2055_vm12 = vmmov %vm2038_vm15 }
 0x23f   :  { %v699_v37 = vadd.s32 %v698_v58, %v697_v11  ;;  %v747_v42 = vsel %vm2038_vm15, %v746_v50, %v745_v14  ;;  %v2039_v25 = vmov 0   ;;  %vm832_vm5 = vcmp.lt.s32.totalorder %v1824_v32, 4 }
 0x240   :  { %v750_v7 = vsel %vm749_vm8, %v748_v5, %v747_v42  ;;  %vm871_vm6 = vcmask 3072   ;;  %v2042_v0 = vsub.f32 %v2040_v49, %v2041_v12  ;;  %v2045_v1 = vsub.f32 %v2043_v57, %v2044_v59 }
 0x241   :  { %vm717_vm9 = vcmp.ge.s32.totalorder %v699_v37, %v709_v2  ;;  %v753_v45 = vsel %vm752_vm14, %v751_v29, %v750_v7  ;;  %v2048_v23 = vsub.f32 %v2046_v26, %v2047_v27  ;;  %v2049_v2 = vld [vmem:[#allocation20_spill] sm:$0xff]  ;;  %vm857_vm0 = vcmask 60416  }
 0x242   :  { %v927_v51 = vsel %vm717_vm9, 1.0, %v1092_v18  ;;  %v756_v9 = vsel %vm755_vm10, %v754_v31, %v753_v45  ;;  %v2050_v18 = vld [vmem:[#allocation22_spill] sm:$0xff]  ;;  %vm863_vm11 = vcmask 1043456  }
 0x243   :  { %v757_v54 = vrot.slane %v927_v51, 1  ;;  %v2051_v30 = vsub.f32 %v2049_v2, %v2050_v18 }
 0x245   :  { %v759_v34 = vsel %vm758_vm3, %v757_v54, %v756_v9 }
 0x246   :  { %v761_v52 = vsel %vm2035_vm4, %v759_v34, 0.0 }
 0x247   :  { %v762_v19 = vrot.slane %v761_v52, 4 }
 0x249   :  { %v763_v55 = vadd.f32 %v762_v19, %v761_v52 }
 0x24b   :  { %v764_v39 = vrot.slane %v763_v55, 2 }
 0x24d   :  { %v765_v17 = vadd.f32 %v764_v39, %v763_v55 }
 0x24f   :  { %v766_v40 = vrot.slane %v765_v17, 1 }
 0x251   :  { %v767_v35 = vadd.f32 %v766_v40, %v765_v17 }
 0x253   :  { %768 = vxpose.xlu1.b32.start.end [1/1] (short) (narrow) %v767_v35, 8 }
 0x2a6   :  { %939 = vset.pattern.permute.xlu1 %v2039_v25 }
 0x2f7   :  { %v784_v46 = vpop.trf.xlu1 }
 0x2f8   :  { %v800_v6 = vmul.f32 0.125, %v784_v46 }
 0x2fa   :  { %807 = vperm.xlu2 %937, %v800_v6   ;;  %v862_v56 = vsel %vm832_vm5, %v800_v6, 0.0 }
 0x2fb   :  { %v872_v62 = vsel %vm871_vm6, %v862_v56, 0.0 }
 0x2fc   :  { %v873_v63 = vrot.slane %v872_v62, 4 }
 0x2fe   :  { %v874_v41 = vadd.f32 %v873_v63, %v872_v62 }
 0x300   :  { %v875_v15 = vrot.slane %v874_v41, 2 }
 0x302   :  { %v876_v4 = vadd.f32 %v875_v15, %v874_v41 }
 0x304   :  { %v877_v24 = vrot.slane %v876_v4, 1 }
 0x306   :  { %v878_v20 = vadd.f32 %v877_v24, %v876_v4 }
 0x354   :  { %v808_v47 = vpop.permute.xlu2 %807 }
 0x355   :  { %v809_v10 = vperm.slane %v808_v47, 0  ;;  %v810_v21 = vperm.slane %v808_v47, 1  ;;  %v811_v48 = vperm.slane %v808_v47, 2  ;;  %v812_v33 = vperm.slane %v808_v47, 3 }
 0x357   :  { %v819_v43 = vadd.f32 %v811_v48, %v2042_v0  ;;  %v818_v8 = vadd.f32 %v810_v21, %v2045_v1  ;;  %v817_v38 = vadd.f32 %v809_v10, %v2048_v23  ;;  %v820_v44 = vadd.f32 %v812_v33, %v2051_v30 }
 0x359   :  { %v823_v60 = vadd.f32 1.0, %v819_v43  ;;  %v822_v36 = vadd.f32 1.0, %v818_v8  ;;  %v821_v28 = vadd.f32 1.0, %v817_v38  ;;  %v824_v37 = vadd.f32 1.0, %v820_v44 }
 0x35b   :  { %v827_v61 = vmax.f32 %v823_v60, 0.0  ;;  %v826_v58 = vmax.f32 %v822_v36, 0.0  ;;  %v825_v11 = vmax.f32 %v821_v28, 0.0  ;;  %v828_v22 = vmax.f32 %v824_v37, 0.0 }
 0x35d   :  { %844 = vperm.xlu2 %937, %v827_v61   ;;  %841 = vperm.xlu1 %939, %v826_v58  }
 0x35e   :  { %838 = vperm.xlu0 %938, %v825_v11  }
 0x365   :  { %847 = vperm.xlu2 %937, %v828_v22  }
 0x366   :  { %882 = vperm.xlu0 %938, %v878_v20  }
 0x3b7   :  { %v845_v53 = vpop.permute.xlu2 %844 }
 0x3b8   :  { %v851_v5 = vperm.slane %v845_v53, %v2052_v13 }
 0x3bf   :  { %v848_v3 = vpop.permute.xlu2 %847 }
 0x3c0   :  { %v852_v42 = vperm.slane %v848_v3, %v2052_v13 }
 0x3cf   :  { %v842_v16 = vpop.permute.xlu1 %841 }
 0x3d0   :  { %v850_v50 = vperm.slane %v842_v16, %v2052_v13  ;;  %v839_v51 = vpop.permute.xlu0 %838 }
 0x3d1   :  { %v849_v14 = vperm.slane %v839_v51, %v2052_v13 }
 0x3d3   :  { %v853_v29 = vsel %vm2053_vm7, %v850_v50, %v849_v14 }
 0x3d4   :  { %v854_v7 = vsel %vm2054_vm13, %v851_v5, %v853_v29 }
 0x3d5   :  { %v855_v31 = vsel %vm2055_vm12, %v852_v42, %v854_v7 }
 0x3d6   :  { %v858_v45 = vsel %vm857_vm0, %v855_v31, 0.0 }
 0x3d7   :  { %859 = vadd.xlane.f32.xlu1 %v858_v45 }
 0x3d8   :  { %v883_v54 = vpop.permute.xlu0 %882 }
 0x3d9   :  { %885 = vst [vmem:[#allocation9] sm:$0xff] %v883_v54 }
 0x3da   :  { %907 = dma.vmem_to_hbm [thread:$0]  %s903_s2, 128, %s905_s7, [#allocation10]  }
 0x44a   :  { %v860_v9 = vpop.xlane.xlu1 %859 }
 0x44b   :  { %v861_v34 = vsel %vm832_vm5, %v860_v9, 0.0 }
 0x44c   :  { %v864_v52 = vsel %vm863_vm11, %v861_v34, 0.0 }
 0x44d   :  { %v865_v19 = vrot.slane %v864_v52, 4 }
 0x44f   :  { %v866_v55 = vadd.f32 %v865_v19, %v864_v52 }
 0x451   :  { %v867_v39 = vrot.slane %v866_v55, 2 }
 0x453   :  { %v868_v17 = vadd.f32 %v867_v39, %v866_v55 }
 0x455   :  { %v869_v40 = vrot.slane %v868_v17, 1 }
 0x457   :  { %v870_v35 = vadd.f32 %v869_v40, %v868_v17 }
 0x459   :  { %879 = vst [vmem:[#allocation8] sm:$0xff] %v870_v35 }
 0x45a   :  { %896 = dma.vmem_to_hbm [thread:$0]  %s892_s9, 128, %s894_s12, [#allocation4]  }
 0x45b   :  { %1082 = dma.done.wait [#allocation4], 128  }
 0x45c   :  { %1083 = vsyncadd [#allocation4], 4294967168 }
 0x45d   :  { %1084 = dma.done.wait [#allocation10], 128  }
 0x45e   :  { %1085 = vsyncadd [#allocation10], 4294967168 }
 0x45f   :  { %916 = vsyncpa [#allocation3], 1 }
 0x460   :  { %917 = vsyncpa [#allocation6], 1 }
 0x461   :  { %918 = vsyncpa [#allocation4], 1 }
 0x462   :  { %919 = vsyncpa [#allocation10], 1 }

</bundles_post_ra>
